<compile_context>
chip_gen: v7x
topology: tpu7x:2x2x1
jax: 0.10.0
libtpu: 0.0.40
codegen_flags: <defaults>
</compile_context>

<pallas_src>
import jax
import jax.numpy as jnp
from jax.experimental import pallas as pl
from jax.experimental.pallas import tpu as pltpu

BETA = 0.95
THRESHOLD = 1.0
NUM_INPUTS = 256
NUM_HIDDEN = 5
NUM_OUTPUTS = 10
BATCH = 1
NUM_STEPS = BATCH          # module defines num_steps = batch_size = 1

H_SUB = 8                  # hidden dim padded to one sublane tile
O_PAD = 128                # output dim padded to one lane tile

# --- packed parameter slab layout (one VMEM operand, ~20 KB) ----------------
SLAB_W = 640               # 5 lane tiles of 128
W1_OFF = 0                 # [:,   0:256)  W1
W2_OFF = 256               # [:, 256:384)  W2^T (padded to 128 output lanes)
B1_OFF = 384               # [:, 384]      b1 column (hidden on sublanes)
B2_OFF = 512               # [0, 512:640)  b2 row    (outputs on lanes)


def snn_kernel(x_ref, slab_ref, out_ref):
    # x_ref:    (1, 1, NUM_INPUTS)   one sample per grid step
    # slab_ref: (H_SUB, SLAB_W)      resident packed params
    # out_ref:  (1, NUM_STEPS, O_PAD)
    x = x_ref[0]                                                 # (1, 256)

    # Static, tile-aligned carves of the packed slab (no runtime cost).
    w1 = slab_ref[:, W1_OFF:W1_OFF + NUM_INPUTS]                 # (8, 256)
    w2 = slab_ref[:, W2_OFF:W2_OFF + O_PAD]                      # (8, 128)
    b1 = slab_ref[:, B1_OFF:B1_OFF + 1]                          # (8, 1)
    b2 = slab_ref[0:1, B2_OFF:B2_OFF + O_PAD]                    # (1, 128)

    # fc1: x is loop-invariant, so cur1 is hoisted out of the step loop.
    # Broadcast of the single input row over 8 hidden sublanes (VPU) followed
    # by a lane reduction over 256 lanes (XLU).
    cur1 = jnp.sum(x * w1, axis=-1, keepdims=True) + b1          # (8, 1)

    mem1 = jnp.zeros((H_SUB, 1), jnp.float32)                    # lif1.init_leaky()
    mem2 = jnp.zeros((1, O_PAD), jnp.float32)                    # lif2.init_leaky()

    # NUM_STEPS == 1: unrolled at trace time; step-0 terms on the all-zero
    # membranes constant-fold away.
    for step in range(NUM_STEPS):
        reset1 = (mem1 > THRESHOLD).astype(jnp.float32)
        mem1 = BETA * mem1 + cur1 - reset1 * THRESHOLD
        spk1 = (mem1 > THRESHOLD).astype(jnp.float32)            # (8, 1)

        # fc2: sublane reduction over the 8 (padded) hidden neurons (XLU).
        cur2 = jnp.sum(spk1 * w2, axis=0, keepdims=True) + b2    # (1, 128)
        reset2 = (mem2 > THRESHOLD).astype(jnp.float32)
        mem2 = BETA * mem2 + cur2 - reset2 * THRESHOLD
        spk2 = (mem2 > THRESHOLD).astype(jnp.float32)            # (1, 128)

        out_ref[0, step:step + 1, :] = spk2                      # lane-dense store


def prepare_params(w1, b1, w2, b2):
    """One-time (init-time) packing of the PyTorch-Linear parameters.

    w1: (NUM_HIDDEN, NUM_INPUTS), b1: (NUM_HIDDEN,),
    w2: (NUM_OUTPUTS, NUM_HIDDEN), b2: (NUM_OUTPUTS,).
    Hidden axis padded to 8 sublanes, output axis to 128 lanes; padded
    rows/lanes carry zero weight + zero bias so they never spike.
    Returns a single (H_SUB, SLAB_W) f32 slab.
    """
    slab = jnp.zeros((H_SUB, SLAB_W), jnp.float32)
    slab = slab.at[:NUM_HIDDEN, W1_OFF:W1_OFF + NUM_INPUTS].set(w1)
    slab = slab.at[:NUM_HIDDEN, W2_OFF:W2_OFF + NUM_OUTPUTS].set(w2.T)
    slab = slab.at[:NUM_HIDDEN, B1_OFF].set(b1)
    slab = slab.at[0, B2_OFF:B2_OFF + NUM_OUTPUTS].set(b2)
    return slab


@jax.jit
def pulse_transformation(x, slab):
    """Run the module forward for B independent samples.

    x:    (B, 1, NUM_INPUTS) float32 -- B stacked module inputs (batch=1 each).
    slab: (H_SUB, SLAB_W) packed params from prepare_params().
    Returns padded spikes (B, NUM_STEPS, O_PAD); consumers slice [..., :NUM_OUTPUTS].
    """
    b = x.shape[0]
    return pl.pallas_call(
        snn_kernel,
        out_shape=jax.ShapeDtypeStruct((b, NUM_STEPS, O_PAD), jnp.float32),
        grid=(b,),
        in_specs=[
            pl.BlockSpec((1, 1, NUM_INPUTS), lambda i: (i, 0, 0)),
            pl.BlockSpec((H_SUB, SLAB_W), lambda i: (0, 0)),   # resident params
        ],
        out_specs=pl.BlockSpec((1, NUM_STEPS, O_PAD), lambda i: (i, 0, 0)),
        compiler_params=pltpu.CompilerParams(
            dimension_semantics=("parallel",)),                 # 2-TC shard on v7x
    )(x, slab)


def reference(x, w1, b1, w2, b2):
    """Pure-JAX reference for one module call. x: (1, NUM_INPUTS)."""
    mem1 = jnp.zeros((x.shape[0], NUM_HIDDEN), jnp.float32)
    mem2 = jnp.zeros((x.shape[0], NUM_OUTPUTS), jnp.float32)
    spk2_rec = []
    for _ in range(NUM_STEPS):
        cur1 = x @ w1.T + b1
        reset1 = (mem1 > THRESHOLD).astype(jnp.float32)
        mem1 = BETA * mem1 + cur1 - reset1 * THRESHOLD
        spk1 = (mem1 > THRESHOLD).astype(jnp.float32)
        cur2 = spk1 @ w2.T + b2
        reset2 = (mem2 > THRESHOLD).astype(jnp.float32)
        mem2 = BETA * mem2 + cur2 - reset2 * THRESHOLD
        spk2 = (mem2 > THRESHOLD).astype(jnp.float32)
        spk2_rec.append(spk2)
    return jnp.stack(spk2_rec, axis=0)      # (NUM_STEPS, 1, NUM_OUTPUTS)


if __name__ == "__main__":
    key = jax.random.PRNGKey(0)
    kx, kxb, k1w, k1b, k2w, k2b = jax.random.split(key, 6)

    # Deterministic init, same scheme as torch.nn.Linear (U(-1/sqrt(fan_in), ...)).
    bound1 = 1.0 / (NUM_INPUTS ** 0.5)
    bound2 = 1.0 / (NUM_HIDDEN ** 0.5)
    w1 = jax.random.uniform(k1w, (NUM_HIDDEN, NUM_INPUTS), jnp.float32, -bound1, bound1)
    b1 = jax.random.uniform(k1b, (NUM_HIDDEN,), jnp.float32, -bound1, bound1)
    w2 = jax.random.uniform(k2w, (NUM_OUTPUTS, NUM_HIDDEN), jnp.float32, -bound2, bound2)
    b2 = jax.random.uniform(k2b, (NUM_OUTPUTS,), jnp.float32, -bound2, bound2)

    # --- init-time (once): pack all params into the single slab --------------
    slab = jax.block_until_ready(prepare_params(w1, b1, w2, b2))

    # --- module-faithful single call: x shape (B=1, batch=1, 256) ------------
    x = 4.0 * jax.random.normal(kx, (1, BATCH, NUM_INPUTS), jnp.float32)
    out = jax.block_until_ready(pulse_transformation(x, slab))
    assert out.shape == (1, NUM_STEPS, O_PAD), out.shape
    out_mod = out[0, :, :NUM_OUTPUTS][:, None, :]     # (num_steps, batch, num_outputs)
    ref = reference(x[0], w1, b1, w2, b2)
    assert out_mod.shape == (NUM_STEPS, BATCH, NUM_OUTPUTS), out_mod.shape
    assert jnp.allclose(out_mod, ref, atol=1e-5), (out_mod, ref)

    # --- batched per-sample inference: one gridded pallas_call, B=4 ----------
    xb = 4.0 * jax.random.normal(kxb, (4, BATCH, NUM_INPUTS), jnp.float32)
    outb = jax.block_until_ready(pulse_transformation(xb, slab))
    assert outb.shape == (4, NUM_STEPS, O_PAD), outb.shape
    for s in range(4):
        refs = reference(xb[s], w1, b1, w2, b2)
        assert jnp.allclose(outb[s, :, :NUM_OUTPUTS], refs[:, 0, :], atol=1e-5), s

    print("KERNEL_OK")
</pallas_src>

<mosaic_0001>
module attributes {stable_mosaic.version = 11 : i64} {
  func.func @snn_kernel(%arg0: i32, %arg1: memref<1x1x256xf32, #tpu.memory_space<vmem>>, %arg2: memref<8x640xf32, #tpu.memory_space<vmem>>, %arg3: memref<1x1x128xf32, #tpu.memory_space<vmem>>) attributes {dimension_semantics = [#tpu.dimension_semantics<parallel>], iteration_bounds = array<i64: 1>, scalar_prefetch = 0 : i64, scratch_operands = 0 : i64, tpu.core_type = #tpu.core_type<tc>, window_params = [{transform_indices = @transform_0, window_bounds = array<i64: 1, 1, 256>}, {pipeline_mode = #tpu.pipeline_mode<synchronous>, transform_indices = @transform_1, window_bounds = array<i64: 8, 640>}, {transform_indices = @transform_2, window_bounds = array<i64: 1, 1, 128>}]} {
    %c0 = arith.constant 0 : index
    %c0_0 = arith.constant 0 : index
    %c0_1 = arith.constant 0 : index
    %0 = vector.load %arg1[%c0, %c0_0, %c0_1] : memref<1x1x256xf32, #tpu.memory_space<vmem>>, vector<1x1x256xf32>
    %1 = vector.shape_cast %0 : vector<1x1x256xf32> to vector<1x256xf32>
    %c0_2 = arith.constant 0 : index
    %c0_3 = arith.constant 0 : index
    %2 = vector.load %arg2[%c0_2, %c0_3] : memref<8x640xf32, #tpu.memory_space<vmem>>, vector<8x256xf32>
    %c0_4 = arith.constant 0 : index
    %c256 = arith.constant 256 : index
    %3 = vector.load %arg2[%c0_4, %c256] : memref<8x640xf32, #tpu.memory_space<vmem>>, vector<8x128xf32>
    %c0_5 = arith.constant 0 : index
    %c384 = arith.constant 384 : index
    %4 = vector.load %arg2[%c0_5, %c384] : memref<8x640xf32, #tpu.memory_space<vmem>>, vector<8x1xf32>
    %c0_6 = arith.constant 0 : index
    %c512 = arith.constant 512 : index
    %5 = vector.load %arg2[%c0_6, %c512] : memref<8x640xf32, #tpu.memory_space<vmem>>, vector<1x128xf32>
    %6 = vector.broadcast %1 : vector<1x256xf32> to vector<8x256xf32>
    %7 = arith.mulf %6, %2 : vector<8x256xf32>
    %cst = arith.constant dense<0.000000e+00> : vector<8xf32>
    %8 = vector.multi_reduction <add>, %7, %cst [1] : vector<8x256xf32> to vector<8xf32>
    %9 = vector.shape_cast %8 : vector<8xf32> to vector<8x1xf32>
    %10 = arith.addf %9, %4 : vector<8x1xf32>
    %cst_7 = arith.constant 0.000000e+00 : f32
    %11 = vector.broadcast %cst_7 : f32 to vector<8x1xf32>
    %cst_8 = arith.constant 0.000000e+00 : f32
    %12 = vector.broadcast %cst_8 : f32 to vector<1x128xf32>
    %cst_9 = arith.constant 1.000000e+00 : f32
    %13 = vector.broadcast %cst_9 : f32 to vector<8x1xf32>
    %14 = arith.cmpf ogt, %11, %13 : vector<8x1xf32>
    %15 = arith.extui %14 : vector<8x1xi1> to vector<8x1xi32>
    %16 = arith.sitofp %15 : vector<8x1xi32> to vector<8x1xf32>
    %cst_10 = arith.constant 0.949999988 : f32
    %17 = vector.broadcast %cst_10 : f32 to vector<8x1xf32>
    %18 = arith.mulf %17, %11 : vector<8x1xf32>
    %19 = arith.addf %18, %10 : vector<8x1xf32>
    %cst_11 = arith.constant 1.000000e+00 : f32
    %20 = vector.broadcast %cst_11 : f32 to vector<8x1xf32>
    %21 = arith.mulf %16, %20 : vector<8x1xf32>
    %22 = arith.subf %19, %21 : vector<8x1xf32>
    %cst_12 = arith.constant 1.000000e+00 : f32
    %23 = vector.broadcast %cst_12 : f32 to vector<8x1xf32>
    %24 = arith.cmpf ogt, %22, %23 : vector<8x1xf32>
    %25 = arith.extui %24 : vector<8x1xi1> to vector<8x1xi32>
    %26 = arith.sitofp %25 : vector<8x1xi32> to vector<8x1xf32>
    %27 = vector.broadcast %26 : vector<8x1xf32> to vector<8x128xf32>
    %28 = arith.mulf %27, %3 : vector<8x128xf32>
    %cst_13 = arith.constant dense<0.000000e+00> : vector<128xf32>
    %29 = vector.multi_reduction <add>, %28, %cst_13 [0] : vector<8x128xf32> to vector<128xf32>
    %30 = vector.shape_cast %29 : vector<128xf32> to vector<1x128xf32>
    %31 = arith.addf %30, %5 : vector<1x128xf32>
    %cst_14 = arith.constant 1.000000e+00 : f32
    %32 = vector.broadcast %cst_14 : f32 to vector<1x128xf32>
    %33 = arith.cmpf ogt, %12, %32 : vector<1x128xf32>
    %34 = arith.extui %33 : vector<1x128xi1> to vector<1x128xi32>
    %35 = arith.sitofp %34 : vector<1x128xi32> to vector<1x128xf32>
    %cst_15 = arith.constant 0.949999988 : f32
    %36 = vector.broadcast %cst_15 : f32 to vector<1x128xf32>
    %37 = arith.mulf %36, %12 : vector<1x128xf32>
    %38 = arith.addf %37, %31 : vector<1x128xf32>
    %cst_16 = arith.constant 1.000000e+00 : f32
    %39 = vector.broadcast %cst_16 : f32 to vector<1x128xf32>
    %40 = arith.mulf %35, %39 : vector<1x128xf32>
    %41 = arith.subf %38, %40 : vector<1x128xf32>
    %cst_17 = arith.constant 1.000000e+00 : f32
    %42 = vector.broadcast %cst_17 : f32 to vector<1x128xf32>
    %43 = arith.cmpf ogt, %41, %42 : vector<1x128xf32>
    %44 = arith.extui %43 : vector<1x128xi1> to vector<1x128xi32>
    %45 = arith.sitofp %44 : vector<1x128xi32> to vector<1x128xf32>
    %c0_18 = arith.constant 0 : index
    %c0_19 = arith.constant 0 : index
    %c0_20 = arith.constant 0 : index
    %46 = vector.load %arg3[%c0_18, %c0_19, %c0_20] : memref<1x1x128xf32, #tpu.memory_space<vmem>>, vector<1x1x128xf32>
    %47 = vector.shape_cast %46 : vector<1x1x128xf32> to vector<1x128xf32>
    %48 = vector.shape_cast %45 : vector<1x128xf32> to vector<1x1x128xf32>
    tpu.vector_store %arg3[%c0_18, %c0_19, %c0_20], %48 {strides = array<i32>} : memref<1x1x128xf32, #tpu.memory_space<vmem>>, vector<1x1x128xf32>,
    return
  }
  func.func @transform_0(%arg0: i32) -> (i32, i32, i32) {
    %c0_i32 = arith.constant 0 : i32
    %c0_i32_0 = arith.constant 0 : i32
    %c0_i32_1 = arith.constant 0 : i32
    return %arg0, %c0_i32, %c0_i32_0 : i32, i32, i32
  }
  func.func @transform_1(%arg0: i32) -> (i32, i32) {
    %c0_i32 = arith.constant 0 : i32
    %c0_i32_0 = arith.constant 0 : i32
    %c0_i32_1 = arith.constant 0 : i32
    return %c0_i32, %c0_i32_0 : i32, i32
  }
  func.func @transform_2(%arg0: i32) -> (i32, i32, i32) {
    %c0_i32 = arith.constant 0 : i32
    %c0_i32_0 = arith.constant 0 : i32
    %c0_i32_1 = arith.constant 0 : i32
    return %arg0, %c0_i32, %c0_i32_0 : i32, i32, i32
  }
}

</mosaic_0001>

<bundles_post_ra>
// kernel: pulse_transformation.1
= control target key start
LH: loop header
LB: loop body
LE: loop exit
PB: predicated region body
PF: predicated region fallthrough
CT: control target
= control target key end

     0   :  { %7 = vsyncpa [#allocation3], 0  ;;  %s238_s0 = inlined_call_operand.hbm [shape: f32[1,1,256], index: 0, kind: input, shape index: {}]   ;;  %s239_s1 = inlined_call_operand.hbm [shape: f32[8,640], index: 1, kind: input, shape index: {}]   ;;  %s240_s2 = inlined_call_operand.hbm [shape: f32[1,1,128], index: 2, kind: output, shape index: {}]  }
   0x1   :  { %8 = vsyncpa [#allocation6], 0 }
   0x2   :  { %9 = vsyncpa [#allocation4], 0  ;;  %s182_s9 = smov [#allocation2]   ;;  %s183_s11 = smov [#allocation5]  }
   0x3   :  { %s16_s10 = sshll.u32 %s182_s9, 4  ;;  %s26_s12 = sshll.u32 %s183_s11, 4  ;;  %s17_s10 = int_to_ptr.vmem [resolvable:$true] %s16_s10  ;;  %s27_s12 = int_to_ptr.vmem [resolvable:$true] %s26_s12 }
   0x4   :  { %s110_s15 = scalar_lea.hbm %s238_s0, 32 }
   0x5   :  { %p111_p0 = scmp.ne.s32.totalorder %s238_s0, %s110_s15  ;;  %p114_p1 = scmp.lt.u32.totalorder %s110_s15, %s238_s0 }
   0x7   :  { %p116_p2 = pnand %p114_p1, %p111_p0 }
   0x9   :  { %119 = shalt.err (!%p116_p2)
}
   0xa   :  { %s120_s20 = scalar_lea.vmem %s17_s10, 32  ;;  %p125_p4 = scmp.lt.s32.totalorder %s17_s10, %s17_s10 }
   0xb   :  { %p121_p3 = scmp.ne.s32.totalorder %s17_s10, %s120_s20  ;;  %p126_p5 = scmp.lt.s32.totalorder %s120_s20, %s120_s20 }
   0xd   :  { %p127_p6 = por %p126_p5, %p125_p4 }
   0xf   :  { %p128_p7 = pnand %p127_p6, %p121_p3 }
  0x11   :  { %131 = shalt.err (!%p128_p7)
}
  0x12   :  { %19 = dma.hbm_to_vmem [thread:$0]  %s238_s0, 32, %s17_s10, [#allocation3]  }
  0x13   :  { %s132_s25 = scalar_lea.hbm %s239_s1, 640 }
  0x14   :  { %p133_p8 = scmp.ne.s32.totalorder %s239_s1, %s132_s25  ;;  %p136_p9 = scmp.lt.u32.totalorder %s132_s25, %s239_s1 }
  0x16   :  { %p138_p10 = pnand %p136_p9, %p133_p8 }
  0x18   :  { %141 = shalt.err (!%p138_p10)
}
  0x19   :  { %s142_s30 = scalar_lea.vmem %s27_s12, 640  ;;  %p147_p12 = scmp.lt.s32.totalorder %s27_s12, %s27_s12 }
  0x1a   :  { %p143_p11 = scmp.ne.s32.totalorder %s27_s12, %s142_s30  ;;  %p148_p13 = scmp.lt.s32.totalorder %s142_s30, %s142_s30 }
  0x1c   :  { %p149_p0 = por %p148_p13, %p147_p12 }
  0x1e   :  { %p150_p1 = pnand %p149_p0, %p143_p11 }
  0x20   :  { %153 = shalt.err (!%p150_p1)
}
  0x21   :  { %29 = dma.hbm_to_vmem [thread:$0]  %s239_s1, 640, %s27_s12, [#allocation6]  }
  0x22   :  { %176 = dma.done.wait [#allocation3], 32  }
  0x23   :  { %177 = vsyncadd [#allocation3], 4294967264 }
  0x24   :  { %178 = dma.done.wait [#allocation6], 640  }
  0x25   :  { %179 = vsyncadd [#allocation6], 4294966656  ;;  %v43_v0 = vlaneseq  ;;  %v36_v4 = vld [vmem:[#allocation2] sm:$0x3]  ;;  %v37_v5 = vld [vmem:[#allocation5] sm:$0xff]  ;;  %v184_v12 = vmov 0  }
  0x26   :  { %v38_v6 = vld [vmem:[#allocation5 + $0x8] sm:$0xff]  ;;  %109 = vset.pattern.permute.xlu0 %v184_v12  ;;  %v40_v13 = vld [vmem:[#allocation5 + $0x18] sm:$0xff]  ;;  %v185_v16 = vmov 0.0   ;;  %v39_v18 = vld [vmem:[#allocation5 + $0x10] sm:$0xff]  ;;  %s186_s1 = smov [#allocation7]  }
  0x27   :  { %v44_v1 = vshrl.u32 %v43_v0, 7  ;;  %v41_v26 = vld [vmem:[#allocation5 + $0x20] ss:$0 sm:$0xff]  ;;  %s92_s4 = sshll.u32 %s186_s1, 4  ;;  %s93_s4 = int_to_ptr.vmem [resolvable:$true] %s92_s4 }
  0x28   :  { %s154_s5 = scalar_lea.vmem %s93_s4, 16  ;;  %s158_s6 = scalar_lea.vmem %s93_s4, 32 }
  0x29   :  { %v45_v2 = vsub.s32 0, %v44_v1  ;;  %v49_v3 = vsub.s32 1, %v44_v1  ;;  %p155_p2 = scmp.ne.s32.totalorder %s93_s4, %s154_s5  ;;  %p159_p3 = scmp.lt.s32.totalorder %s93_s4, %s93_s4 }
  0x2a   :  { %p160_p4 = scmp.lt.s32.totalorder %s158_s6, %s154_s5 }
  0x2b   :  { %v46_v7 = vrot.slane %v36_v4, %v45_v2  ;;  %v50_v8 = vrot.slane %v36_v4, %v49_v3 }
  0x2c   :  { %p161_p5 = por %p160_p4, %p159_p3 }
  0x2d   :  { %v53_v9 = vmul.f32 %v46_v7, %v37_v5  ;;  %v54_v10 = vmul.f32 %v50_v8, %v38_v6 }
  0x2e   :  { %p162_p6 = pnand %p161_p5, %p155_p2 }
  0x2f   :  { %v55_v11 = vadd.f32 %v54_v10, %v53_v9 }
  0x31   :  { %56 = vadd.xlane.f32.xlu0 %v55_v11 }
  0xbe   :  { %v57_v14 = vpop.xlane.xlu0 %56 }
  0xbf   :  { %v58_v15 = vadd.f32 %v57_v14, %v40_v13 }
  0xc1   :  { %vm64_vm0 = vcmp.gt.f32.partialorder %v58_v15, 1.0 }
  0xc2   :  { %v102_v17 = vsel %vm64_vm0, 1.0, %v185_v16 }
  0xc3   :  { %69 = vperm.xlu0 %109, %v102_v17  }
 0x142   :  { %v70_v19 = vpop.permute.xlu0 %69 }
 0x143   :  { %v72_v20 = vmul.f32 %v70_v19, %v39_v18 }
 0x145   :  { %v73_v21 = vrot.slane %v72_v20, 4 }
 0x147   :  { %v74_v22 = vadd.f32 %v73_v21, %v72_v20 }
 0x149   :  { %v75_v23 = vrot.slane %v74_v22, 2 }
 0x14b   :  { %v76_v24 = vadd.f32 %v75_v23, %v74_v22 }
 0x14d   :  { %v77_v25 = vrot.slane %v76_v24, 1 }
 0x14f   :  { %v78_v27 = vadd.f32 %v77_v25, %v76_v24 }
 0x151   :  { %v79_v28 = vadd.f32 %v78_v27, %v41_v26 }
 0x153   :  { %vm82_vm1 = vcmp.gt.f32.partialorder %v79_v28, 1.0 }
 0x154   :  { %v103_v29 = vsel %vm82_vm1, 1.0, %v185_v16 }
 0x155   :  { %85 = vst [vmem:[#allocation7] sm:$0x1] %v103_v29 }
 0x156   :  { %165 = shalt.err (!%p162_p6)
}
 0x157   :  { %s166_s9 = scalar_lea.hbm %s240_s2, 16 }
 0x158   :  { %p167_p7 = scmp.ne.s32.totalorder %s240_s2, %s166_s9  ;;  %p170_p8 = scmp.lt.u32.totalorder %s166_s9, %s240_s2 }
 0x15a   :  { %p172_p9 = pnand %p170_p8, %p167_p7 }
 0x15c   :  { %175 = shalt.err (!%p172_p9)
}
 0x15d   :  { %95 = dma.vmem_to_hbm [thread:$0]  %s93_s4, 16, %s240_s2, [#allocation4]  }
 0x15e   :  { %180 = dma.done.wait [#allocation4], 16  }
 0x15f   :  { %181 = vsyncadd [#allocation4], 4294967280 }
 0x160   :  { %99 = vsyncpa [#allocation3], 1 }
 0x161   :  { %100 = vsyncpa [#allocation6], 1 }
 0x162   :  { %101 = vsyncpa [#allocation4], 1 }

</bundles_post_ra>
